<compile_context>
chip_gen: v6e
topology: v6e:2x2x1
jax: 0.10.0
libtpu: 0.0.40
codegen_flags: <defaults>
</compile_context>

<pallas_src>
import jax
import jax.numpy as jnp
import numpy as np
from jax.experimental import pallas as pl
from jax.experimental.pallas import tpu as pltpu


# --------------------------- packed-weight layout --------------------------- #
# rows [0, S)  : W[:, :S].T   ([in, out] layout so the matmul needs no transpose)
# row  S       : W[:, S]      (action column)          -- 8-sublane aligned
# row  S + 8   : bias                                  -- 8-sublane aligned
# total rows   : S + 16
_EXTRA_ROWS = 16


def prepare_params(weight, bias):
    """One-time (init-time) prep of the nn.Linear parameters.

    weight: [S, S+1] (PyTorch nn.Linear layout [out, in]);  bias: [S]
    returns a single packed [S + 16, S] f32 array.
    """
    S = weight.shape[0]
    w_state = jnp.transpose(weight[:, :S]).astype(jnp.float32)   # [S(in), S(out)]
    extras = jnp.zeros((_EXTRA_ROWS, S), jnp.float32)
    extras = extras.at[0].set(weight[:, S].astype(jnp.float32))  # action column
    extras = extras.at[8].set(bias.astype(jnp.float32))          # bias
    return jnp.concatenate([w_state, extras], axis=0)            # [S+16, S]


# ------------------------------ Pallas kernels ------------------------------ #

def _dynamics_step_kernel(a_ref, s_ref, w_ref, o_ref):
    # a_ref : (1,)       SMEM f32  (action scalar)
    # s_ref : [B, S]     VMEM      (state)
    # w_ref : [S+16, S]  VMEM      (packed weight: Ws rows, Wa row, bias row)
    # o_ref : [B, S]     VMEM      (predicted next state)
    S = w_ref.shape[1]
    acc = jnp.dot(s_ref[...], w_ref[0:S, :], preferred_element_type=jnp.float32)
    wa = w_ref[S:S + 1, :]
    b = w_ref[S + 8:S + 9, :]
    o_ref[...] = acc + a_ref[0] * wa + b


def _dynamics_batched_kernel(a_ref, s_ref, w_ref, o_ref):
    # a_ref : (T,)        SMEM f32  (scalar-prefetched per-step actions)
    # s_ref : [1, B, S]   VMEM      (state block for grid step t)
    # w_ref : [S+16, S]   VMEM      (packed weight, resident across all t)
    # o_ref : [1, B, S]   VMEM
    t = pl.program_id(0)
    S = w_ref.shape[1]
    acc = jnp.dot(s_ref[0], w_ref[0:S, :], preferred_element_type=jnp.float32)
    wa = w_ref[S:S + 1, :]
    b = w_ref[S + 8:S + 9, :]
    o_ref[0] = acc + a_ref[t] * wa + b


# ------------------------------- JAX wrappers ------------------------------- #

@jax.jit
def dynamics_forward(state, action, w_packed):
    """Single step == DynamicsModel.forward(state, action).

    state: [B, S] f32, action: scalar, w_packed: [S+16, S] from prepare_params.
    """
    B, S = state.shape
    a = jnp.asarray(action, jnp.float32).reshape(1)          # 1-D SMEM scalar
    vmem = pl.BlockSpec(memory_space=pltpu.MemorySpace.VMEM)
    smem = pl.BlockSpec(memory_space=pltpu.MemorySpace.SMEM)
    return pl.pallas_call(
        _dynamics_step_kernel,
        out_shape=jax.ShapeDtypeStruct((B, S), jnp.float32),
        in_specs=[smem, vmem, vmem],
        out_specs=vmem,
    )(a, state, w_packed)


@jax.jit
def dynamics_forward_batched(states, actions, w_packed):
    """T independent forward steps fused into ONE pallas_call.

    states: [T, B, S] f32, actions: [T], w_packed: [S+16, S].
    Weight is loaded once and stays resident in VMEM (constant-block
    index_map); per-step actions are scalar-prefetched into SMEM; the env axis
    is "parallel" so it shards across both TensorCores on v7x.
    """
    T, B, S = states.shape
    grid_spec = pltpu.PrefetchScalarGridSpec(
        num_scalar_prefetch=1,
        grid=(T,),
        in_specs=[
            pl.BlockSpec((1, B, S), lambda t, a: (t, 0, 0)),
            pl.BlockSpec((S + _EXTRA_ROWS, S), lambda t, a: (0, 0)),  # resident
        ],
        out_specs=pl.BlockSpec((1, B, S), lambda t, a: (t, 0, 0)),
    )
    return pl.pallas_call(
        _dynamics_batched_kernel,
        out_shape=jax.ShapeDtypeStruct((T, B, S), jnp.float32),
        grid_spec=grid_spec,
        compiler_params=pltpu.CompilerParams(
            dimension_semantics=("parallel",)),
    )(actions.astype(jnp.float32), states, w_packed)


# ---------------------------- pure-JAX reference ---------------------------- #

def dynamics_reference(state, action, weight, bias):
    a_col = jnp.full((state.shape[0], 1), jnp.asarray(action, jnp.float32))
    x = jnp.concatenate([state, a_col], axis=1)              # [B, S+1]
    return x @ weight.T + bias                               # [B, S]


# ---------------------------------- main ------------------------------------ #

if __name__ == "__main__":
    key = jax.random.PRNGKey(0)
    B = 1      # module semantics: action is unsqueezed to [1, 1]
    S = 32     # encoded_state_size
    T = 8      # independent env steps for the amortized variant

    k_w, k_b, k_s, k_a = jax.random.split(key, 4)
    weight = 0.1 * jax.random.normal(k_w, (S, S + 1), jnp.float32)  # [out, in]
    bias = 0.1 * jax.random.normal(k_b, (S,), jnp.float32)
    states = jax.random.normal(k_s, (T, B, S), jnp.float32)
    actions = jax.random.randint(k_a, (T,), 0, 4).astype(jnp.float32)

    # One-time parameter packing (init-time, off the per-step path).
    w_packed = jax.block_until_ready(prepare_params(weight, bias))

    # --- single step: exact DynamicsModel.forward semantics ---
    out1 = jax.block_until_ready(
        dynamics_forward(states[0], float(actions[0]), w_packed))
    ref1 = dynamics_reference(states[0], float(actions[0]), weight, bias)
    assert out1.shape == (B, S)
    np.testing.assert_allclose(np.asarray(out1), np.asarray(ref1),
                               rtol=1e-5, atol=1e-5)

    # --- T steps fused into one pallas_call (amortized launch/DMA cost) ---
    outT = jax.block_until_ready(
        dynamics_forward_batched(states, actions, w_packed))
    refT = jnp.stack([dynamics_reference(states[t], actions[t], weight, bias)
                      for t in range(T)])
    assert outT.shape == (T, B, S)
    np.testing.assert_allclose(np.asarray(outT), np.asarray(refT),
                               rtol=1e-5, atol=1e-5)

    print("KERNEL_OK")
</pallas_src>

<mosaic_0001>
module attributes {stable_mosaic.version = 11 : i64} {
  func.func @_dynamics_step_kernel(%arg0: memref<1xf32, #tpu.memory_space<smem>>, %arg1: memref<1x32xf32, #tpu.memory_space<vmem>>, %arg2: memref<48x32xf32, #tpu.memory_space<vmem>>, %arg3: memref<1x32xf32, #tpu.memory_space<vmem>>) attributes {dimension_semantics = [], scalar_prefetch = 0 : i64, scratch_operands = 0 : i64, tpu.core_type = #tpu.core_type<tc>} {
    %c0 = arith.constant 0 : index
    %c0_0 = arith.constant 0 : index
    %0 = vector.load %arg1[%c0, %c0_0] : memref<1x32xf32, #tpu.memory_space<vmem>>, vector<1x32xf32>
    %c0_1 = arith.constant 0 : index
    %c0_2 = arith.constant 0 : index
    %1 = vector.load %arg2[%c0_1, %c0_2] : memref<48x32xf32, #tpu.memory_space<vmem>>, vector<32x32xf32>
    %cst = arith.constant dense<0.000000e+00> : vector<1x32xf32>
    %2 = tpu.matmul %0, %1, %cst {dimension_numbers = #tpu.dot_dimension_numbers<[1], [0], [0], [1], [0, 0, 1, 1], [], []>} : vector<1x32xf32>, vector<32x32xf32>, vector<1x32xf32> -> vector<1x32xf32>
    %c32 = arith.constant 32 : index
    %c0_3 = arith.constant 0 : index
    %3 = vector.load %arg2[%c32, %c0_3] : memref<48x32xf32, #tpu.memory_space<vmem>>, vector<1x32xf32>
    %c40 = arith.constant 40 : index
    %c0_4 = arith.constant 0 : index
    %4 = vector.load %arg2[%c40, %c0_4] : memref<48x32xf32, #tpu.memory_space<vmem>>, vector<1x32xf32>
    %c0_5 = arith.constant 0 : index
    %5 = memref.load %arg0[%c0_5] : memref<1xf32, #tpu.memory_space<smem>>
    %6 = vector.broadcast %5 : f32 to vector<1x32xf32>
    %7 = arith.mulf %6, %3 : vector<1x32xf32>
    %8 = arith.addf %2, %7 : vector<1x32xf32>
    %9 = arith.addf %8, %4 : vector<1x32xf32>
    %c0_6 = arith.constant 0 : index
    %c0_7 = arith.constant 0 : index
    %10 = vector.load %arg3[%c0_6, %c0_7] : memref<1x32xf32, #tpu.memory_space<vmem>>, vector<1x32xf32>
    tpu.vector_store %arg3[%c0_6, %c0_7], %9 {strides = array<i32>} : memref<1x32xf32, #tpu.memory_space<vmem>>, vector<1x32xf32>,
    return
  }
}

</mosaic_0001>

<bundles_post_ra>
// kernel: dynamics_forward.1
= control target key start
LH: loop header
LB: loop body
LE: loop exit
PB: predicated region body
PF: predicated region fallthrough
CT: control target
= control target key end

     0   :  { %v159_v1 = vmov 0.0   ;;  %vm160_vm0 = vmmov 0   ;;  %s209_s0 = inlined_call_operand.<no memory space> [shape: f32[1], index: 0, kind: input, shape index: {}]   ;;  %s210_s1 = inlined_call_operand.vmem [shape: f32[1,32], index: 1, kind: input, shape index: {}]   ;;  %s211_s2 = inlined_call_operand.vmem [shape: f32[48,32], index: 2, kind: input, shape index: {}]   ;;  %s212_s3 = inlined_call_operand.hbm [shape: f32[1,32], index: 3, kind: output, shape index: {}]  }
   0x1   :  { %v20_v0 = vld [vmem:[%s211_s2 + $0x18] sm:$0xff]  ;;  %123 = vmatprep.subr.mxu0 %v159_v1  ;;  %v19_v2 = vld [vmem:[%s211_s2 + $0x10] sm:$0xff]  ;;  %131 = vmatprep.mubr.msk.f32.mxu0 %vm160_vm0, %v159_v1 }
   0x2   :  { %124 = vmatpush3.msra.mxu0 %v20_v0 }
   0x3   :  { %9 = vsyncpa [#allocation4], 0  ;;  %125 = vmatprep.subr.mxu0 %v159_v1  ;;  %v18_v3 = vld [vmem:[%s211_s2 + $0x8] sm:$0xff]  ;;  %v17_v4 = vld [vmem:[%s211_s2] sm:$0xff]  ;;  %vm26_vm1 = vcmask 261120   ;;  %v24_v7 = vstv %s209_s0  ;;  %s161_s28 = smov [#allocation3]  }
   0x4   :  { %126 = vmatpush3.msra.mxu0 %v19_v2  ;;  %v16_v5 = vld [vmem:[%s210_s1] sm:$0x1]  ;;  %v22_v9 = vld [vmem:[%s211_s2 + $0x28] sm:$0x1]  ;;  %s109_s1 = sshll.u32 %s161_s28, 4  ;;  %vm101_vm2 = vcmask 253952   ;;  %s110_s1 = int_to_ptr.vmem [resolvable:$true] %s109_s1 }
   0x5   :  { %127 = vmatprep.subr.mxu0 %v159_v1  ;;  %v21_v6 = vld [vmem:[%s211_s2 + $0x20] sm:$0x1]  ;;  %s137_s29 = scalar_lea.vmem %s110_s1, 16  ;;  %s141_s30 = scalar_lea.vmem %s110_s1, 32 }
   0x6   :  { %128 = vmatpush3.msra.mxu0 %v18_v3  ;;  %v25_v8 = vmul.f32 %v24_v7, %v21_v6  ;;  %p138_p0 = scmp.ne.s32.totalorder %s110_s1, %s137_s29  ;;  %p142_p1 = scmp.lt.s32.totalorder %s110_s1, %s110_s1 }
   0x7   :  { %129 = vmatprep.subr.mxu0 %v159_v1  ;;  %p143_p2 = scmp.lt.s32.totalorder %s141_s30, %s137_s29 }
   0x8   :  { %130 = vmatpush3.msra.mxu0 %v17_v4 }
   0x9   :  { %132 = vmatmul.mubr.msk.f32.vlgmr.msra.gmra.mxu0 %vm26_vm1, %v16_v5  ;;  %p144_p3 = por %p143_p2, %p142_p1 }
   0xb   :  { %p145_p4 = pnand %p144_p3, %p138_p0 }
  0xc9   :  { %v96_v10 = vpop.f32.mrf.mxu0 }
  0xca   :  { %v97_v11 = vadd.f32 %v96_v10, %v25_v8 }
  0xcb   :  { %v133_v12 = vpop.f32.mrf.mxu0 }
  0xcc   :  { %v100_v13 = vadd.f32 %v97_v11, %v22_v9 }
  0xce   :  { %102 = vst.msk [vmem:[#allocation3] sm:$0x1] %vm101_vm2, %v100_v13 }
  0xcf   :  { %148 = shalt.err (!%p145_p4)
}
  0xd0   :  { %112 = dma.vmem_to_hbm [thread:$0]  %s110_s1, 16, %s212_s3, [#allocation4]  }
  0xd1   :  { %157 = dma.done.wait [#allocation4], 16  }
  0xd2   :  { %158 = vsyncadd [#allocation4], 4294967280 }
  0xd3   :  { %116 = vsyncpa [#allocation4], 1 }

</bundles_post_ra>
